<compile_context>
chip_gen: v5e
topology: v5e:2x2
jax: 0.10.0
libtpu: 0.0.40
codegen_flags: <defaults>
</compile_context>

<pallas_src>
import jax
import jax.numpy as jnp
from jax.experimental import pallas as pl
from jax.experimental.pallas import tpu as pltpu


def _sigmoid(z):
    # exp goes to the EUP; the single f32 divide on the VPU is negligible here.
    return 1.0 / (1.0 + jnp.exp(-z))


def _pairwise_kernel(
    xw_ref,      # (1, 320)  lanes 0:256 = x, lanes 256:292 = w, rest zero
    hc_ref,      # (2, 32)   row 0 = h0, row 1 = c0
    w1_ref,      # (256, 128)
    w1ax_ref,    # (128, 128) fc1a weight rows 0:128 (acts on fc1 output)
    w1aw_ref,    # (64, 128)  fc1a weight rows 128:164, zero-padded to 64
    w1b_ref,     # (128, 128)
    w1c_ref,     # (128, 64)
    w2_ref,      # (64, 32)
    w34_ref,     # (64, 32)   rows 0:32 = fc3 weight, rows 32:64 = fc4 weight
    wlstm_ref,   # (64, 128)  rows 0:32 = weight_ih.T, rows 32:64 = weight_hh.T
    bias_ref,    # (8, 128)   packed biases + fc5 weight row (see wrapper)
    out_ref,     # (1, 1)
    hc_out_ref,  # (2, 32)    row 0 = h', row 1 = c'
):
    f32 = jnp.float32

    def dot(u, v):
        return jnp.dot(u, v, preferred_element_type=f32)

    def relu(z):
        return jnp.maximum(z, 0.0)

    x = xw_ref[:, 0:256]            # (1, 256)
    wpad = xw_ref[:, 256:320]       # (1, 64)   zero-padded action one-hot/feat

    b1 = bias_ref[0:1, :]
    b1a = bias_ref[1:2, :]
    b1b = bias_ref[2:3, :]
    b1c = bias_ref[3:4, 0:64]
    b2 = bias_ref[3:4, 64:96]
    b3 = bias_ref[3:4, 96:128]
    bsum = bias_ref[4:5, :]         # LSTM bias_ih + bias_hh, gate order i,f,g,o
    b4 = bias_ref[5:6, 0:32]
    w5_row = bias_ref[5:6, 32:64]   # fc5 weight as a row vector
    b5 = bias_ref[5:6, 64:65]

    # trunk: fc1 .. fc3 (fc1a implemented as a split matmul over [fc1(x), w])
    a = relu(dot(x, w1_ref[...]) + b1)                                   # fc1
    a = relu(dot(a, w1ax_ref[...]) + dot(wpad, w1aw_ref[...]) + b1a)     # fc1a
    a = relu(dot(a, w1b_ref[...]) + b1b)                                 # fc1b
    a = relu(dot(a, w1c_ref[...]) + b1c)                                 # fc1c
    a = relu(dot(a, w2_ref[...]) + b2)                                   # fc2
    a = relu(dot(a, w34_ref[0:32, :]) + b3)                              # fc3

    # LSTMCell(32, 32): two wide matmuls + one wide sigmoid / tanh pass.
    h0 = hc_ref[0:1, :]
    c0 = hc_ref[1:2, :]
    gates = (dot(a, wlstm_ref[0:32, :])
             + dot(h0, wlstm_ref[32:64, :])
             + bsum)                                                     # (1,128)
    sg = _sigmoid(gates)
    tg = jnp.tanh(gates)
    i_g = sg[:, 0:32]
    f_g = sg[:, 32:64]
    g_g = tg[:, 64:96]
    o_g = sg[:, 96:128]

    c_new = f_g * c0 + i_g * g_g
    h_new = o_g * jnp.tanh(c_new)

    # head: fc4 + relu, then fc5 as VPU multiply + lane reduction (no MXU).
    y = relu(dot(h_new, w34_ref[32:64, :]) + b4)                         # fc4
    y5 = jnp.sum(y * w5_row, axis=-1, keepdims=True) + b5                # fc5

    out_ref[...] = _sigmoid(y5)
    hc_out_ref[0:1, :] = h_new
    hc_out_ref[1:2, :] = c_new


def pairwise_is_action_taken_lstm(x, w, h0, c0, params):
    """x:(256,), w:(36,), h0/c0:(1,32).  Returns (sigmoid out (1,1), h', c')."""
    p = params
    f32 = jnp.float32

    # (1, 320) slab: x in lanes 0:256, w in lanes 256:292, zeros elsewhere.
    xw = jnp.zeros((1, 320), f32)
    xw = xw.at[0, 0:256].set(x.astype(f32))
    xw = xw.at[0, 256:256 + 36].set(w.astype(f32))

    hc0 = jnp.concatenate([h0.astype(f32), c0.astype(f32)], axis=0)      # (2,32)

    # fc1a split: rows 0:128 act on fc1(x); rows 128:164 act on w (pad K to 64).
    w1a_x = p["w1a"][:128, :]
    w1a_w = jnp.zeros((64, 128), f32).at[0:36, :].set(p["w1a"][128:164, :])

    # stacked small weights.
    w34 = jnp.concatenate([p["w3"], p["w4"]], axis=0)                    # (64,32)
    w_lstm = jnp.concatenate([p["wih"], p["whh"]], axis=0)               # (64,128)

    # packed bias / small-vector slab (8,128).
    bias_slab = jnp.zeros((8, 128), f32)
    bias_slab = bias_slab.at[0, :].set(p["b1"][0])
    bias_slab = bias_slab.at[1, :].set(p["b1a"][0])
    bias_slab = bias_slab.at[2, :].set(p["b1b"][0])
    bias_slab = bias_slab.at[3, 0:64].set(p["b1c"][0])
    bias_slab = bias_slab.at[3, 64:96].set(p["b2"][0])
    bias_slab = bias_slab.at[3, 96:128].set(p["b3"][0])
    bias_slab = bias_slab.at[4, :].set((p["bih"] + p["bhh"])[0])
    bias_slab = bias_slab.at[5, 0:32].set(p["b4"][0])
    bias_slab = bias_slab.at[5, 32:64].set(p["w5"][:, 0])                # fc5 row
    bias_slab = bias_slab.at[5, 64].set(p["b5"][0, 0])

    inputs = [
        xw, hc0,
        p["w1"], w1a_x, w1a_w, p["w1b"], p["w1c"], p["w2"],
        w34, w_lstm, bias_slab,
    ]

    vmem_spec = pl.BlockSpec(memory_space=pltpu.MemorySpace.VMEM)
    out_shape = (
        jax.ShapeDtypeStruct((1, 1), jnp.float32),
        jax.ShapeDtypeStruct((2, 32), jnp.float32),
    )
    out, hc_new = pl.pallas_call(
        _pairwise_kernel,
        out_shape=out_shape,
        in_specs=[vmem_spec] * len(inputs),
        out_specs=(vmem_spec, vmem_spec),
    )(*inputs)
    return out, hc_new[0:1, :], hc_new[1:2, :]


# ---------------------------------------------------------------------------
# deterministic parameter construction (PyTorch-default-style uniform init)
# ---------------------------------------------------------------------------
def _linear(key, fan_in, fan_out):
    kw, kb = jax.random.split(key)
    bound = 1.0 / float(fan_in) ** 0.5
    W = jax.random.uniform(kw, (fan_in, fan_out), jnp.float32, -bound, bound)
    b = jax.random.uniform(kb, (1, fan_out), jnp.float32, -bound, bound)
    return W, b


def make_params(key):
    keys = jax.random.split(key, 12)
    p = {}
    p["w1"], p["b1"] = _linear(keys[0], 256, 128)
    p["w1a"], p["b1a"] = _linear(keys[1], 164, 128)
    p["w1b"], p["b1b"] = _linear(keys[2], 128, 128)
    p["w1c"], p["b1c"] = _linear(keys[3], 128, 64)
    p["w2"], p["b2"] = _linear(keys[4], 64, 32)
    p["w3"], p["b3"] = _linear(keys[5], 32, 32)
    # LSTMCell(32, 32): torch weight_ih/hh are (128,32) -> store transposed.
    bound = 1.0 / 32.0 ** 0.5
    k6, k7, k8, k9 = jax.random.split(keys[6], 4)
    p["wih"] = jax.random.uniform(k6, (32, 128), jnp.float32, -bound, bound)
    p["whh"] = jax.random.uniform(k7, (32, 128), jnp.float32, -bound, bound)
    p["bih"] = jax.random.uniform(k8, (1, 128), jnp.float32, -bound, bound)
    p["bhh"] = jax.random.uniform(k9, (1, 128), jnp.float32, -bound, bound)
    p["w4"], p["b4"] = _linear(keys[7], 32, 32)
    p["w5"], p["b5"] = _linear(keys[8], 32, 1)
    # action embedding (unused in forward, kept for module parity)
    p["action_embedding"] = jax.random.normal(keys[9], (1, 36), jnp.float32)
    return p


# ---------------------------------------------------------------------------
# pure-JAX reference mirroring the torch forward exactly (1-D tensors + cat)
# ---------------------------------------------------------------------------
def reference_forward(x, w, h0, c0, p):
    relu = lambda v: jnp.maximum(v, 0.0)
    a = relu(x @ p["w1"] + p["b1"][0])                     # (128,)
    a = jnp.concatenate([a, w], axis=0)                    # torch.cat dim=0 -> (164,)
    a = relu(a @ p["w1a"] + p["b1a"][0])
    a = relu(a @ p["w1b"] + p["b1b"][0])
    a = relu(a @ p["w1c"] + p["b1c"][0])
    a = relu(a @ p["w2"] + p["b2"][0])
    a = relu(a @ p["w3"] + p["b3"][0])                     # (32,)
    gates = a @ p["wih"] + h0[0] @ p["whh"] + p["bih"][0] + p["bhh"][0]
    i_g = jax.nn.sigmoid(gates[0:32])
    f_g = jax.nn.sigmoid(gates[32:64])
    g_g = jnp.tanh(gates[64:96])
    o_g = jax.nn.sigmoid(gates[96:128])
    c_new = f_g * c0[0] + i_g * g_g
    h_new = o_g * jnp.tanh(c_new)
    y = relu(h_new @ p["w4"] + p["b4"][0])
    y = y @ p["w5"] + p["b5"][0]
    return jax.nn.sigmoid(y), h_new, c_new


if __name__ == "__main__":
    key = jax.random.PRNGKey(0)
    kx, kw, kh, kc, kp = jax.random.split(key, 5)
    x = jax.random.normal(kx, (256,), jnp.float32)
    w = jax.random.normal(kw, (36,), jnp.float32)
    h0 = jax.random.normal(kh, (1, 32), jnp.float32)       # self.hidden-style state
    c0 = jax.random.normal(kc, (1, 32), jnp.float32)
    params = make_params(kp)

    out, h_new, c_new = pairwise_is_action_taken_lstm(x, w, h0, c0, params)
    jax.block_until_ready((out, h_new, c_new))

    ref_out, ref_h, ref_c = reference_forward(x, w, h0, c0, params)
    assert jnp.allclose(out[0], ref_out, atol=1e-5, rtol=1e-5), "output mismatch"
    assert jnp.allclose(h_new[0], ref_h, atol=1e-5, rtol=1e-5), "h mismatch"
    assert jnp.allclose(c_new[0], ref_c, atol=1e-5, rtol=1e-5), "c mismatch"

    # TODO(synk): for real workloads, add a leading batch axis with a "parallel"
    # grid dimension (M>=128) — batch-1 uses <1% of the MXU rows by construction.
    print("KERNEL_OK")
</pallas_src>

<mosaic_0001>
module attributes {stable_mosaic.version = 11 : i64} {
  func.func @_pairwise_kernel(%arg0: memref<1x320xf32, #tpu.memory_space<vmem>>, %arg1: memref<2x32xf32, #tpu.memory_space<vmem>>, %arg2: memref<256x128xf32, #tpu.memory_space<vmem>>, %arg3: memref<128x128xf32, #tpu.memory_space<vmem>>, %arg4: memref<64x128xf32, #tpu.memory_space<vmem>>, %arg5: memref<128x128xf32, #tpu.memory_space<vmem>>, %arg6: memref<128x64xf32, #tpu.memory_space<vmem>>, %arg7: memref<64x32xf32, #tpu.memory_space<vmem>>, %arg8: memref<64x32xf32, #tpu.memory_space<vmem>>, %arg9: memref<64x128xf32, #tpu.memory_space<vmem>>, %arg10: memref<8x128xf32, #tpu.memory_space<vmem>>, %arg11: memref<1x1xf32, #tpu.memory_space<vmem>>, %arg12: memref<2x32xf32, #tpu.memory_space<vmem>>) attributes {dimension_semantics = [], scalar_prefetch = 0 : i64, scratch_operands = 0 : i64, tpu.core_type = #tpu.core_type<tc>} {
    %c0 = arith.constant 0 : index
    %c0_0 = arith.constant 0 : index
    %0 = vector.load %arg0[%c0, %c0_0] : memref<1x320xf32, #tpu.memory_space<vmem>>, vector<1x256xf32>
    %c0_1 = arith.constant 0 : index
    %c256 = arith.constant 256 : index
    %1 = vector.load %arg0[%c0_1, %c256] : memref<1x320xf32, #tpu.memory_space<vmem>>, vector<1x64xf32>
    %c0_2 = arith.constant 0 : index
    %c0_3 = arith.constant 0 : index
    %2 = vector.load %arg10[%c0_2, %c0_3] : memref<8x128xf32, #tpu.memory_space<vmem>>, vector<1x128xf32>
    %c1 = arith.constant 1 : index
    %c0_4 = arith.constant 0 : index
    %3 = vector.load %arg10[%c1, %c0_4] : memref<8x128xf32, #tpu.memory_space<vmem>>, vector<1x128xf32>
    %c2 = arith.constant 2 : index
    %c0_5 = arith.constant 0 : index
    %4 = vector.load %arg10[%c2, %c0_5] : memref<8x128xf32, #tpu.memory_space<vmem>>, vector<1x128xf32>
    %c3 = arith.constant 3 : index
    %c0_6 = arith.constant 0 : index
    %5 = vector.load %arg10[%c3, %c0_6] : memref<8x128xf32, #tpu.memory_space<vmem>>, vector<1x64xf32>
    %c3_7 = arith.constant 3 : index
    %c64 = arith.constant 64 : index
    %6 = vector.load %arg10[%c3_7, %c64] : memref<8x128xf32, #tpu.memory_space<vmem>>, vector<1x32xf32>
    %c3_8 = arith.constant 3 : index
    %c96 = arith.constant 96 : index
    %7 = vector.load %arg10[%c3_8, %c96] : memref<8x128xf32, #tpu.memory_space<vmem>>, vector<1x32xf32>
    %c4 = arith.constant 4 : index
    %c0_9 = arith.constant 0 : index
    %8 = vector.load %arg10[%c4, %c0_9] : memref<8x128xf32, #tpu.memory_space<vmem>>, vector<1x128xf32>
    %c5 = arith.constant 5 : index
    %c0_10 = arith.constant 0 : index
    %9 = vector.load %arg10[%c5, %c0_10] : memref<8x128xf32, #tpu.memory_space<vmem>>, vector<1x32xf32>
    %c5_11 = arith.constant 5 : index
    %c32 = arith.constant 32 : index
    %10 = vector.load %arg10[%c5_11, %c32] : memref<8x128xf32, #tpu.memory_space<vmem>>, vector<1x32xf32>
    %c5_12 = arith.constant 5 : index
    %c64_13 = arith.constant 64 : index
    %11 = vector.load %arg10[%c5_12, %c64_13] : memref<8x128xf32, #tpu.memory_space<vmem>>, vector<1x1xf32>
    %c0_14 = arith.constant 0 : index
    %c0_15 = arith.constant 0 : index
    %12 = vector.load %arg2[%c0_14, %c0_15] : memref<256x128xf32, #tpu.memory_space<vmem>>, vector<256x128xf32>
    %cst = arith.constant dense<0.000000e+00> : vector<1x128xf32>
    %13 = tpu.matmul %0, %12, %cst {dimension_numbers = #tpu.dot_dimension_numbers<[1], [0], [0], [1], [0, 0, 1, 1], [], []>} : vector<1x256xf32>, vector<256x128xf32>, vector<1x128xf32> -> vector<1x128xf32>
    %14 = arith.addf %13, %2 : vector<1x128xf32>
    %cst_16 = arith.constant 0.000000e+00 : f32
    %15 = vector.broadcast %cst_16 : f32 to vector<1x128xf32>
    %16 = arith.maximumf %14, %15 : vector<1x128xf32>
    %c0_17 = arith.constant 0 : index
    %c0_18 = arith.constant 0 : index
    %17 = vector.load %arg3[%c0_17, %c0_18] : memref<128x128xf32, #tpu.memory_space<vmem>>, vector<128x128xf32>
    %cst_19 = arith.constant dense<0.000000e+00> : vector<1x128xf32>
    %18 = tpu.matmul %16, %17, %cst_19 {dimension_numbers = #tpu.dot_dimension_numbers<[1], [0], [0], [1], [0, 0, 1, 1], [], []>} : vector<1x128xf32>, vector<128x128xf32>, vector<1x128xf32> -> vector<1x128xf32>
    %c0_20 = arith.constant 0 : index
    %c0_21 = arith.constant 0 : index
    %19 = vector.load %arg4[%c0_20, %c0_21] : memref<64x128xf32, #tpu.memory_space<vmem>>, vector<64x128xf32>
    %cst_22 = arith.constant dense<0.000000e+00> : vector<1x128xf32>
    %20 = tpu.matmul %1, %19, %cst_22 {dimension_numbers = #tpu.dot_dimension_numbers<[1], [0], [0], [1], [0, 0, 1, 1], [], []>} : vector<1x64xf32>, vector<64x128xf32>, vector<1x128xf32> -> vector<1x128xf32>
    %21 = arith.addf %18, %20 : vector<1x128xf32>
    %22 = arith.addf %21, %3 : vector<1x128xf32>
    %cst_23 = arith.constant 0.000000e+00 : f32
    %23 = vector.broadcast %cst_23 : f32 to vector<1x128xf32>
    %24 = arith.maximumf %22, %23 : vector<1x128xf32>
    %c0_24 = arith.constant 0 : index
    %c0_25 = arith.constant 0 : index
    %25 = vector.load %arg5[%c0_24, %c0_25] : memref<128x128xf32, #tpu.memory_space<vmem>>, vector<128x128xf32>
    %cst_26 = arith.constant dense<0.000000e+00> : vector<1x128xf32>
    %26 = tpu.matmul %24, %25, %cst_26 {dimension_numbers = #tpu.dot_dimension_numbers<[1], [0], [0], [1], [0, 0, 1, 1], [], []>} : vector<1x128xf32>, vector<128x128xf32>, vector<1x128xf32> -> vector<1x128xf32>
    %27 = arith.addf %26, %4 : vector<1x128xf32>
    %cst_27 = arith.constant 0.000000e+00 : f32
    %28 = vector.broadcast %cst_27 : f32 to vector<1x128xf32>
    %29 = arith.maximumf %27, %28 : vector<1x128xf32>
    %c0_28 = arith.constant 0 : index
    %c0_29 = arith.constant 0 : index
    %30 = vector.load %arg6[%c0_28, %c0_29] : memref<128x64xf32, #tpu.memory_space<vmem>>, vector<128x64xf32>
    %cst_30 = arith.constant dense<0.000000e+00> : vector<1x64xf32>
    %31 = tpu.matmul %29, %30, %cst_30 {dimension_numbers = #tpu.dot_dimension_numbers<[1], [0], [0], [1], [0, 0, 1, 1], [], []>} : vector<1x128xf32>, vector<128x64xf32>, vector<1x64xf32> -> vector<1x64xf32>
    %32 = arith.addf %31, %5 : vector<1x64xf32>
    %cst_31 = arith.constant 0.000000e+00 : f32
    %33 = vector.broadcast %cst_31 : f32 to vector<1x64xf32>
    %34 = arith.maximumf %32, %33 : vector<1x64xf32>
    %c0_32 = arith.constant 0 : index
    %c0_33 = arith.constant 0 : index
    %35 = vector.load %arg7[%c0_32, %c0_33] : memref<64x32xf32, #tpu.memory_space<vmem>>, vector<64x32xf32>
    %cst_34 = arith.constant dense<0.000000e+00> : vector<1x32xf32>
    %36 = tpu.matmul %34, %35, %cst_34 {dimension_numbers = #tpu.dot_dimension_numbers<[1], [0], [0], [1], [0, 0, 1, 1], [], []>} : vector<1x64xf32>, vector<64x32xf32>, vector<1x32xf32> -> vector<1x32xf32>
    %37 = arith.addf %36, %6 : vector<1x32xf32>
    %cst_35 = arith.constant 0.000000e+00 : f32
    %38 = vector.broadcast %cst_35 : f32 to vector<1x32xf32>
    %39 = arith.maximumf %37, %38 : vector<1x32xf32>
    %c0_36 = arith.constant 0 : index
    %c0_37 = arith.constant 0 : index
    %40 = vector.load %arg8[%c0_36, %c0_37] : memref<64x32xf32, #tpu.memory_space<vmem>>, vector<32x32xf32>
    %cst_38 = arith.constant dense<0.000000e+00> : vector<1x32xf32>
    %41 = tpu.matmul %39, %40, %cst_38 {dimension_numbers = #tpu.dot_dimension_numbers<[1], [0], [0], [1], [0, 0, 1, 1], [], []>} : vector<1x32xf32>, vector<32x32xf32>, vector<1x32xf32> -> vector<1x32xf32>
    %42 = arith.addf %41, %7 : vector<1x32xf32>
    %cst_39 = arith.constant 0.000000e+00 : f32
    %43 = vector.broadcast %cst_39 : f32 to vector<1x32xf32>
    %44 = arith.maximumf %42, %43 : vector<1x32xf32>
    %c0_40 = arith.constant 0 : index
    %c0_41 = arith.constant 0 : index
    %45 = vector.load %arg1[%c0_40, %c0_41] : memref<2x32xf32, #tpu.memory_space<vmem>>, vector<1x32xf32>
    %c1_42 = arith.constant 1 : index
    %c0_43 = arith.constant 0 : index
    %46 = vector.load %arg1[%c1_42, %c0_43] : memref<2x32xf32, #tpu.memory_space<vmem>>, vector<1x32xf32>
    %c0_44 = arith.constant 0 : index
    %c0_45 = arith.constant 0 : index
    %47 = vector.load %arg9[%c0_44, %c0_45] : memref<64x128xf32, #tpu.memory_space<vmem>>, vector<32x128xf32>
    %cst_46 = arith.constant dense<0.000000e+00> : vector<1x128xf32>
    %48 = tpu.matmul %44, %47, %cst_46 {dimension_numbers = #tpu.dot_dimension_numbers<[1], [0], [0], [1], [0, 0, 1, 1], [], []>} : vector<1x32xf32>, vector<32x128xf32>, vector<1x128xf32> -> vector<1x128xf32>
    %c32_47 = arith.constant 32 : index
    %c0_48 = arith.constant 0 : index
    %49 = vector.load %arg9[%c32_47, %c0_48] : memref<64x128xf32, #tpu.memory_space<vmem>>, vector<32x128xf32>
    %cst_49 = arith.constant dense<0.000000e+00> : vector<1x128xf32>
    %50 = tpu.matmul %45, %49, %cst_49 {dimension_numbers = #tpu.dot_dimension_numbers<[1], [0], [0], [1], [0, 0, 1, 1], [], []>} : vector<1x32xf32>, vector<32x128xf32>, vector<1x128xf32> -> vector<1x128xf32>
    %51 = arith.addf %48, %50 : vector<1x128xf32>
    %52 = arith.addf %51, %8 : vector<1x128xf32>
    %cst_50 = arith.constant 0.000000e+00 : f32
    %53 = vector.broadcast %cst_50 : f32 to vector<1x128xf32>
    %54 = arith.subf %53, %52 : vector<1x128xf32>
    %55 = math.exp %54 : vector<1x128xf32>
    %cst_51 = arith.constant 1.000000e+00 : f32
    %56 = vector.broadcast %cst_51 : f32 to vector<1x128xf32>
    %57 = arith.addf %56, %55 : vector<1x128xf32>
    %cst_52 = arith.constant 1.000000e+00 : f32
    %58 = vector.broadcast %cst_52 : f32 to vector<1x128xf32>
    %59 = arith.divf %58, %57 : vector<1x128xf32>
    %60 = math.tanh %52 : vector<1x128xf32>
    %61 = vector.extract_strided_slice %59 {offsets = [0, 0], sizes = [1, 32], strides = [1, 1]} : vector<1x128xf32> to vector<1x32xf32>
    %62 = vector.extract_strided_slice %59 {offsets = [0, 32], sizes = [1, 32], strides = [1, 1]} : vector<1x128xf32> to vector<1x32xf32>
    %63 = vector.extract_strided_slice %60 {offsets = [0, 64], sizes = [1, 32], strides = [1, 1]} : vector<1x128xf32> to vector<1x32xf32>
    %64 = vector.extract_strided_slice %59 {offsets = [0, 96], sizes = [1, 32], strides = [1, 1]} : vector<1x128xf32> to vector<1x32xf32>
    %65 = arith.mulf %62, %46 : vector<1x32xf32>
    %66 = arith.mulf %61, %63 : vector<1x32xf32>
    %67 = arith.addf %65, %66 : vector<1x32xf32>
    %68 = math.tanh %67 : vector<1x32xf32>
    %69 = arith.mulf %64, %68 : vector<1x32xf32>
    %c32_53 = arith.constant 32 : index
    %c0_54 = arith.constant 0 : index
    %70 = vector.load %arg8[%c32_53, %c0_54] : memref<64x32xf32, #tpu.memory_space<vmem>>, vector<32x32xf32>
    %cst_55 = arith.constant dense<0.000000e+00> : vector<1x32xf32>
    %71 = tpu.matmul %69, %70, %cst_55 {dimension_numbers = #tpu.dot_dimension_numbers<[1], [0], [0], [1], [0, 0, 1, 1], [], []>} : vector<1x32xf32>, vector<32x32xf32>, vector<1x32xf32> -> vector<1x32xf32>
    %72 = arith.addf %71, %9 : vector<1x32xf32>
    %cst_56 = arith.constant 0.000000e+00 : f32
    %73 = vector.broadcast %cst_56 : f32 to vector<1x32xf32>
    %74 = arith.maximumf %72, %73 : vector<1x32xf32>
    %75 = arith.mulf %74, %10 : vector<1x32xf32>
    %cst_57 = arith.constant dense<0.000000e+00> : vector<1xf32>
    %76 = vector.multi_reduction <add>, %75, %cst_57 [1] : vector<1x32xf32> to vector<1xf32>
    %77 = vector.shape_cast %76 : vector<1xf32> to vector<1x1xf32>
    %78 = arith.addf %77, %11 : vector<1x1xf32>
    %cst_58 = arith.constant 0.000000e+00 : f32
    %79 = vector.broadcast %cst_58 : f32 to vector<1x1xf32>
    %80 = arith.subf %79, %78 : vector<1x1xf32>
    %81 = math.exp %80 : vector<1x1xf32>
    %cst_59 = arith.constant 1.000000e+00 : f32
    %82 = vector.broadcast %cst_59 : f32 to vector<1x1xf32>
    %83 = arith.addf %82, %81 : vector<1x1xf32>
    %cst_60 = arith.constant 1.000000e+00 : f32
    %84 = vector.broadcast %cst_60 : f32 to vector<1x1xf32>
    %85 = arith.divf %84, %83 : vector<1x1xf32>
    %c0_61 = arith.constant 0 : index
    %c0_62 = arith.constant 0 : index
    %86 = vector.load %arg11[%c0_61, %c0_62] : memref<1x1xf32, #tpu.memory_space<vmem>>, vector<1x1xf32>
    tpu.vector_store %arg11[%c0_61, %c0_62], %85 {strides = array<i32>} : memref<1x1xf32, #tpu.memory_space<vmem>>, vector<1x1xf32>,
    %c0_63 = arith.constant 0 : index
    %c0_64 = arith.constant 0 : index
    %87 = vector.load %arg12[%c0_63, %c0_64] : memref<2x32xf32, #tpu.memory_space<vmem>>, vector<1x32xf32>
    tpu.vector_store %arg12[%c0_63, %c0_64], %69 {strides = array<i32>} : memref<2x32xf32, #tpu.memory_space<vmem>>, vector<1x32xf32>,
    %c1_65 = arith.constant 1 : index
    %c0_66 = arith.constant 0 : index
    %88 = vector.load %arg12[%c1_65, %c0_66] : memref<2x32xf32, #tpu.memory_space<vmem>>, vector<1x32xf32>
    tpu.vector_store %arg12[%c1_65, %c0_66], %67 {strides = array<i32>} : memref<2x32xf32, #tpu.memory_space<vmem>>, vector<1x32xf32>,
    return
  }
}

</mosaic_0001>

<bundles_post_ra>
// kernel: tpu_custom_call.1
= control target key start
LH: loop header
LB: loop body
LE: loop exit
PB: predicated region body
PF: predicated region fallthrough
CT: control target
= control target key end

     0   :  { %18 = vsyncpa [#allocation3], 0  ;;  %s1029_s0 = inlined_call_operand.vmem [shape: f32[1,320], index: 0, kind: input, shape index: {}]   ;;  %s1030_s1 = inlined_call_operand.vmem [shape: f32[2,32], index: 1, kind: input, shape index: {}]   ;;  %s1031_s2 = inlined_call_operand.hbm [shape: f32[256,128], index: 2, kind: input, shape index: {}]   ;;  %s1032_s3 = inlined_call_operand.vmem [shape: f32[128,128], index: 3, kind: input, shape index: {}]   ;;  %s1033_s4 = inlined_call_operand.vmem [shape: f32[64,128], index: 4, kind: input, shape index: {}]   ;;  %s1034_s5 = inlined_call_operand.hbm [shape: f32[128,128], index: 5, kind: input, shape index: {}]   ;;  %s1035_s6 = inlined_call_operand.vmem [shape: f32[128,64], index: 6, kind: input, shape index: {}]   ;;  %s1036_s7 = inlined_call_operand.vmem [shape: f32[64,32], index: 7, kind: input, shape index: {}]   ;;  %s1037_s8 = inlined_call_operand.vmem [shape: f32[64,32], index: 8, kind: input, shape index: {}]   ;;  %s1038_s9 = inlined_call_operand.vmem [shape: f32[64,128], index: 9, kind: input, shape index: {}]   ;;  %s1039_s10 = inlined_call_operand.vmem [shape: f32[8,128], index: 10, kind: input, shape index: {}]   ;;  %s1040_s11 = inlined_call_operand.hbm [shape: f32[1,1], index: 11, kind: output, shape index: {0}]   ;;  %s1041_s12 = inlined_call_operand.hbm [shape: f32[2,32], index: 12, kind: output, shape index: {1}]  }
   0x1   :  { %19 = vsyncpa [#allocation6], 0 }
   0x2   :  { %20 = vsyncpa [#allocation4], 0 }
   0x3   :  { %21 = vsyncpa [#allocation9], 0  ;;  %s30_s23 = sshll.u32 %s1031_s2, 4  ;;  %s707_s24 = smov [#allocation2]   ;;  %s31_s23 = int_to_ptr.hbm [resolvable:$true] %s30_s23 }
   0x4   :  { %s32_s25 = sshll.u32 %s707_s24, 4  ;;  %s47_s28 = sshll.u32 %s1034_s5, 4  ;;  %s33_s25 = int_to_ptr.vmem [resolvable:$true] %s32_s25  ;;  %s48_s28 = int_to_ptr.hbm [resolvable:$true] %s47_s28 }
   0x5   :  { %s708_s29 = smov 128   ;;  %s709_s30 = smov 8  }
   0x6   :  { %38 = dma.hbm_to_vmem [thread:$0]  %s31_s23, 4096, %s33_s25, [#allocation3], %s708_s29, %s708_s29, %s709_s30  }
   0x7   :  { %s710_s13 = smov [#allocation5]  }
   0x8   :  { %s49_s14 = sshll.u32 %s710_s13, 4  ;;  %s50_s14 = int_to_ptr.vmem [resolvable:$true] %s49_s14 }
   0x9   :  { %55 = dma.hbm_to_vmem [thread:$0]  %s48_s28, 2048, %s50_s14, [#allocation6], %s708_s29, %s708_s29, %s709_s30  }
   0xa   :  { %699 = dma.done.wait [#allocation3], 4096  }
   0xb   :  { %700 = vsyncadd [#allocation3], 4294963200 }
   0xc   :  { %701 = dma.done.wait [#allocation6], 2048  }
   0xd   :  { %702 = vsyncadd [#allocation6], 4294965248  ;;  %v97_v0 = vld [vmem:[#allocation2 + $0x78] sm:$0xff]  ;;  %v96_v1 = vld [vmem:[#allocation2 + $0x70] sm:$0xff]  ;;  %vm184_vm0 = vcmask 523264   ;;  %s711_s25 = smov 64  }
   0xe   :  { %v113_v2 = vld [vmem:[#allocation2 + $0xf8] sm:$0xff]  ;;  %119 = vmatpush.msra.mxu0 %v97_v0  ;;  %v112_v3 = vld [vmem:[#allocation2 + $0xf0] sm:$0xff]  ;;  %v95_v4 = vld [vmem:[#allocation2 + $0x68] sm:$0xff]  ;;  %s712_s16 = smov 32   ;;  %vm347_vm1 = vcmask 261120   ;;  %s713_s20 = smov 96  }
   0xf   :  { %139 = vmatpush.msra.mxu1 %v113_v2  ;;  %v111_v5 = vld [vmem:[#allocation2 + $0xe8] sm:$0xff]  ;;  %v94_v6 = vld [vmem:[#allocation2 + $0x60] sm:$0xff]  ;;  %v93_v8 = vld [vmem:[#allocation2 + $0x58] sm:$0xff]  ;;  %vm505_vm6 = vcmask 253952   ;;  %s560_s26 = sshll.u32 %s1041_s12, 4  ;;  %s715_s12 = smov [#allocation7]   ;;  %s561_s26 = int_to_ptr.hbm [resolvable:$true] %s560_s26 }
  0x10   :  { %120 = vmatpush.msra.mxu0 %v96_v1  ;;  %v110_v7 = vld [vmem:[#allocation2 + $0xe0] sm:$0xff]  ;;  %v109_v9 = vld [vmem:[#allocation2 + $0xd8] sm:$0xff]  ;;  %v92_v10 = vld [vmem:[#allocation2 + $0x50] sm:$0xff]  ;;  %s547_s27 = sshll.u32 %s715_s12, 4  ;;  %s549_s30 = sshll.u32 %s1040_s11, 4  ;;  %vm533_vm11 = vcmask 0   ;;  %s548_s27 = int_to_ptr.vmem [resolvable:$true] %s547_s27  ;;  %s550_s30 = int_to_ptr.hbm [resolvable:$true] %s549_s30 }
  0x11   :  { %140 = vmatpush.msra.mxu1 %v112_v3  ;;  %v108_v11 = vld [vmem:[#allocation2 + $0xd0] sm:$0xff]  ;;  %v91_v12 = vld [vmem:[#allocation2 + $0x48] sm:$0xff]  ;;  %v175_v14 = vld [vmem:[%s1032_s3 + $0x78] sm:$0xff] }
  0x12   :  { %121 = vmatpush.msra.mxu0 %v95_v4  ;;  %v107_v13 = vld [vmem:[#allocation2 + $0xc8] sm:$0xff]  ;;  %v174_v15 = vld [vmem:[%s1032_s3 + $0x70] sm:$0xff]  ;;  %v90_v16 = vld [vmem:[#allocation2 + $0x40] sm:$0xff]  ;;  %208 = vmatpush.msra.mxu3 %v175_v14 }
  0x13   :  { %141 = vmatpush.msra.mxu1 %v111_v5  ;;  %v106_v17 = vld [vmem:[#allocation2 + $0xc0] sm:$0xff]  ;;  %v173_v18 = vld [vmem:[%s1032_s3 + $0x68] sm:$0xff]  ;;  %v183_v19 = vld [vmem:[%s1033_s4 + $0x38] sm:$0xff] }
  0x14   :  { %122 = vmatpush.msra.mxu0 %v94_v6  ;;  %v89_v20 = vld [vmem:[#allocation2 + $0x38] sm:$0xff]  ;;  %209 = vmatpush.msra.mxu3 %v174_v15  ;;  %v182_v22 = vld [vmem:[%s1033_s4 + $0x30] sm:$0xff]  ;;  %v172_v23 = vld [vmem:[%s1032_s3 + $0x60] sm:$0xff] }
  0x15   :  { %142 = vmatpush.msra.mxu1 %v110_v7  ;;  %v105_v21 = vld [vmem:[#allocation2 + $0xb8] sm:$0xff]  ;;  %196 = vmatpush.msra.mxu2 %v183_v19  ;;  %v181_v24 = vld [vmem:[%s1033_s4 + $0x28] sm:$0xff]  ;;  %v88_v25 = vld [vmem:[#allocation2 + $0x30] sm:$0xff] }
  0x16   :  { %123 = vmatpush.msra.mxu0 %v93_v8  ;;  %v104_v26 = vld [vmem:[#allocation2 + $0xb0] sm:$0xff]  ;;  %210 = vmatpush.msra.mxu3 %v173_v18  ;;  %v171_v27 = vld [vmem:[%s1032_s3 + $0x58] sm:$0xff]  ;;  %v180_v28 = vld [vmem:[%s1033_s4 + $0x20] sm:$0xff] }
  0x17   :  { %143 = vmatpush.msra.mxu1 %v109_v9  ;;  %197 = vmatpush.msra.mxu2 %v182_v22  ;;  %v87_v29 = vld [vmem:[#allocation2 + $0x28] sm:$0xff]  ;;  %v170_v31 = vld [vmem:[%s1032_s3 + $0x50] sm:$0xff]  ;;  %v86_v32 = vld [vmem:[#allocation2 + $0x20] sm:$0xff] }
  0x18   :  { %124 = vmatpush.msra.mxu0 %v92_v10  ;;  %v103_v30 = vld [vmem:[#allocation2 + $0xa8] sm:$0xff]  ;;  %211 = vmatpush.msra.mxu3 %v172_v23  ;;  %v102_v33 = vld [vmem:[#allocation2 + $0xa0] sm:$0xff]  ;;  %v85_v35 = vld [vmem:[#allocation2 + $0x18] sm:$0xff] }
  0x19   :  { %144 = vmatpush.msra.mxu1 %v108_v11  ;;  %198 = vmatpush.msra.mxu2 %v181_v24  ;;  %v169_v34 = vld [vmem:[%s1032_s3 + $0x48] sm:$0xff]  ;;  %v101_v36 = vld [vmem:[#allocation2 + $0x98] sm:$0xff]  ;;  %v168_v37 = vld [vmem:[%s1032_s3 + $0x40] sm:$0xff] }
  0x1a   :  { %125 = vmatpush.msra.mxu0 %v91_v12  ;;  %212 = vmatpush.msra.mxu3 %v171_v27  ;;  %v84_v38 = vld [vmem:[#allocation2 + $0x10] sm:$0xff]  ;;  %v74_v40 = vld [vmem:[%s1029_s0] sm:$0x3]  ;;  %v167_v41 = vld [vmem:[%s1032_s3 + $0x38] sm:$0xff] }
  0x1b   :  { %145 = vmatpush.msra.mxu1 %v107_v13  ;;  %199 = vmatpush.msra.mxu2 %v180_v28  ;;  %v100_v39 = vld [vmem:[#allocation2 + $0x90] sm:$0xff]  ;;  %v83_v42 = vld [vmem:[#allocation2 + $0x8] sm:$0xff]  ;;  %v82_v45 = vld [vmem:[#allocation2] sm:$0xff]  ;;  %v115_v46 = vperm.slane %v74_v40, 0  ;;  %v116_v48 = vperm.slane %v74_v40, 1 }
  0x1c   :  { %126 = vmatpush.msra.mxu0 %v90_v16  ;;  %213 = vmatpush.msra.mxu3 %v170_v31  ;;  %v99_v43 = vld [vmem:[#allocation2 + $0x88] sm:$0xff]  ;;  %v166_v44 = vld [vmem:[%s1032_s3 + $0x30] sm:$0xff]  ;;  %v98_v47 = vld [vmem:[#allocation2 + $0x80] sm:$0xff] }
  0x1d   :  { %146 = vmatpush.msra.mxu1 %v106_v17  ;;  %v165_v49 = vld [vmem:[%s1032_s3 + $0x28] sm:$0xff]  ;;  %v164_v50 = vld [vmem:[%s1032_s3 + $0x20] sm:$0xff]  ;;  %v179_v51 = vld [vmem:[%s1033_s4 + $0x18] sm:$0xff] }
  0x1e   :  { %127 = vmatpush.msra.mxu0 %v89_v20  ;;  %214 = vmatpush.msra.mxu3 %v169_v34  ;;  %v163_v52 = vld [vmem:[%s1032_s3 + $0x18] sm:$0xff]  ;;  %v178_v53 = vld [vmem:[%s1033_s4 + $0x10] sm:$0xff]  ;;  %v177_v55 = vld [vmem:[%s1033_s4 + $0x8] sm:$0xff] }
  0x1f   :  { %147 = vmatpush.msra.mxu1 %v105_v21  ;;  %200 = vmatpush.msra.mxu2 %v179_v51  ;;  %v162_v54 = vld [vmem:[%s1032_s3 + $0x10] sm:$0xff]  ;;  %v161_v56 = vld [vmem:[%s1032_s3 + $0x8] sm:$0xff]  ;;  %v176_v57 = vld [vmem:[%s1033_s4] sm:$0xff] }
  0x20   :  { %128 = vmatpush.msra.mxu0 %v88_v25  ;;  %215 = vmatpush.msra.mxu3 %v168_v37  ;;  %v160_v58 = vld [vmem:[%s1032_s3] sm:$0xff]  ;;  %v245_v60 = vld [vmem:[#allocation5 + $0x78] sm:$0xff]  ;;  %v244_v61 = vld [vmem:[#allocation5 + $0x70] sm:$0xff] }
  0x21   :  { %148 = vmatpush.msra.mxu1 %v104_v26  ;;  %201 = vmatpush.msra.mxu2 %v178_v53  ;;  %v75_v59 = vld [vmem:[%s1029_s0 + $0x2] sm:$0x1]  ;;  %v243_v62 = vld [vmem:[#allocation5 + $0x68] sm:$0xff]  ;;  %v241_v0 = vld [vmem:[#allocation5 + $0x58] sm:$0xff] }
  0x22   :  { %129 = vmatpush.msra.mxu0 %v87_v29  ;;  %216 = vmatpush.msra.mxu3 %v167_v41  ;;  %v242_v63 = vld [vmem:[#allocation5 + $0x60] sm:$0xff]  ;;  %v240_v1 = vld [vmem:[#allocation5 + $0x50] sm:$0xff]  ;;  %v239_v2 = vld [vmem:[#allocation5 + $0x48] sm:$0xff] }
  0x23   :  { %149 = vmatpush.msra.mxu1 %v103_v30  ;;  %202 = vmatpush.msra.mxu2 %v177_v55  ;;  %v238_v3 = vld [vmem:[#allocation5 + $0x40] sm:$0xff]  ;;  %v237_v4 = vld [vmem:[#allocation5 + $0x38] sm:$0xff]  ;;  %v236_v5 = vld [vmem:[#allocation5 + $0x30] sm:$0xff] }
  0x24   :  { %130 = vmatpush.msra.mxu0 %v86_v32  ;;  %217 = vmatpush.msra.mxu3 %v166_v44  ;;  %v235_v6 = vld [vmem:[#allocation5 + $0x28] sm:$0xff]  ;;  %v234_v7 = vld [vmem:[#allocation5 + $0x20] sm:$0xff]  ;;  %v233_v14 = vld [vmem:[#allocation5 + $0x18] sm:$0xff] }
  0x25   :  { %150 = vmatpush.msra.mxu1 %v102_v33  ;;  %203 = vmatpush.msra.mxu2 %v176_v57  ;;  %v76_v8 = vld [vmem:[%s1039_s10] sm:$0x1]  ;;  %v232_v15 = vld [vmem:[#allocation5 + $0x10] sm:$0xff]  ;;  %v231_v16 = vld [vmem:[#allocation5 + $0x8] sm:$0xff] }
  0x26   :  { %131 = vmatpush.msra.mxu0 %v85_v35  ;;  %218 = vmatpush.msra.mxu3 %v165_v49  ;;  %v230_v17 = vld [vmem:[#allocation5] sm:$0xff]  ;;  %v282_v18 = vld [vmem:[%s1035_s6 + $0x78] sm:$0xff]  ;;  %v281_v19 = vld [vmem:[%s1035_s6 + $0x70] sm:$0xff] }
  0x27   :  { %151 = vmatpush.msra.mxu1 %v101_v36  ;;  %576 = vmatmul.msk.f32.vlgmr.msra.gmra.mxu2 %vm184_vm0, %v75_v59  ;;  %v280_v20 = vld [vmem:[%s1035_s6 + $0x68] sm:$0xff]  ;;  %v279_v21 = vld [vmem:[%s1035_s6 + $0x60] sm:$0xff]  ;;  %v278_v22 = vld [vmem:[%s1035_s6 + $0x58] sm:$0xff] }
  0x28   :  { %132 = vmatpush.msra.mxu0 %v84_v38  ;;  %219 = vmatpush.msra.mxu3 %v164_v50  ;;  %v277_v23 = vld [vmem:[%s1035_s6 + $0x50] sm:$0xff]  ;;  %v276_v24 = vld [vmem:[%s1035_s6 + $0x48] sm:$0xff]  ;;  %v275_v25 = vld [vmem:[%s1035_s6 + $0x40] sm:$0xff] }
  0x29   :  { %152 = vmatpush.msra.mxu1 %v100_v39  ;;  %246 = vmatpush.msrb.mxu2 %v245_v60  ;;  %v274_v26 = vld [vmem:[%s1035_s6 + $0x38] sm:$0xff]  ;;  %v273_v27 = vld [vmem:[%s1035_s6 + $0x30] sm:$0xff]  ;;  %v272_v28 = vld [vmem:[%s1035_s6 + $0x28] sm:$0xff] }
  0x2a   :  { %133 = vmatpush.msra.mxu0 %v83_v42  ;;  %220 = vmatpush.msra.mxu3 %v163_v52  ;;  %v271_v29 = vld [vmem:[%s1035_s6 + $0x20] sm:$0xff]  ;;  %v270_v30 = vld [vmem:[%s1035_s6 + $0x18] sm:$0xff]  ;;  %v269_v37 = vld [vmem:[%s1035_s6 + $0x10] sm:$0xff] }
  0x2b   :  { %153 = vmatpush.msra.mxu1 %v99_v43  ;;  %247 = vmatpush.msrb.mxu2 %v244_v61  ;;  %v77_v32 = vld [vmem:[%s1039_s10 + $0x1] sm:$0x1]  ;;  %v268_v38 = vld [vmem:[%s1035_s6 + $0x8] sm:$0xff]  ;;  %v311_v40 = vld [vmem:[%s1036_s7 + $0x38] sm:$0xff] }
  0x2c   :  { %134 = vmatpush.msra.mxu0 %v82_v45  ;;  %221 = vmatpush.msra.mxu3 %v162_v54  ;;  %v267_v39 = vld [vmem:[%s1035_s6] sm:$0xff]  ;;  %v310_v41 = vld [vmem:[%s1036_s7 + $0x30] sm:$0xff]  ;;  %v309_v42 = vld [vmem:[%s1036_s7 + $0x28] sm:$0xff] }
  0x2d   :  { %154 = vmatpush.msra.mxu1 %v98_v47  ;;  %135 = vmatmul.f32.vlgmr.msra.gmra.mxu0 %v115_v46  ;;  %v308_v43 = vld [vmem:[%s1036_s7 + $0x20] sm:$0xff]  ;;  %v307_v44 = vld [vmem:[%s1036_s7 + $0x18] sm:$0xff]  ;;  %v306_v50 = vld [vmem:[%s1036_s7 + $0x10] sm:$0xff] }
  0x2e   :  { %155 = vmatmul.f32.vlgmr.msra.gmra.mxu1 %v116_v48  ;;  %222 = vmatpush.msra.mxu3 %v161_v56  ;;  %v78_v45 = vld [vmem:[%s1039_s10 + $0x2] sm:$0x1]  ;;  %v79_v49 = vld [vmem:[%s1039_s10 + $0x3] sm:$0x1]  ;;  %v305_v51 = vld [vmem:[%s1036_s7 + $0x8] sm:$0xff] }
  0x2f   :  { %248 = vmatpush.msrb.mxu2 %v243_v62  ;;  %283 = vmatpush.msrb.mxu0 %v282_v18  ;;  %v304_v52 = vld [vmem:[%s1036_s7] sm:$0xff]  ;;  %v343_v53 = vld [vmem:[%s1037_s8 + $0x18] sm:$0xff]  ;;  %v342_v54 = vld [vmem:[%s1037_s8 + $0x10] sm:$0xff] }
  0x30   :  { %223 = vmatpush.msra.mxu3 %v160_v58  ;;  %327 = vmatpush.msrb.mxu1 %v311_v40  ;;  %v341_v58 = vld [vmem:[%s1037_s8 + $0x8] sm:$0xff]  ;;  %v340_v59 = vld [vmem:[%s1037_s8] sm:$0xff]  ;;  %v381_v60 = vld [vmem:[%s1038_s9 + $0x38] sm:$0xff] }
  0x31   :  { %249 = vmatpush.msrb.mxu2 %v242_v63  ;;  %284 = vmatpush.msrb.mxu0 %v281_v19  ;;  %v380_v61 = vld [vmem:[%s1038_s9 + $0x30] sm:$0xff]  ;;  %v377_v62 = vld [vmem:[%s1038_s9 + $0x18] sm:$0xff]  ;;  %v379_v63 = vld [vmem:[%s1038_s9 + $0x28] sm:$0xff] }
  0x32   :  { %328 = vmatpush.msrb.mxu1 %v310_v41  ;;  %313 = vrot.lane.b32.xlu0 %v79_v49, %s711_s25  ;;  %v373_v19 = vld [vmem:[%s1030_s1 + $0x1] sm:$0x1] }
  0x33   :  { %250 = vmatpush.msrb.mxu2 %v241_v0  ;;  %285 = vmatpush.msrb.mxu0 %v280_v20  ;;  %v378_v0 = vld [vmem:[%s1038_s9 + $0x20] sm:$0xff] }
  0x34   :  { %329 = vmatpush.msrb.mxu1 %v309_v42  ;;  %363 = vmatpush.msrb.mxu3 %v343_v53  ;;  %v473_v42 = vld [vmem:[%s1037_s8 + $0x38] sm:$0xff] }
  0x35   :  { %251 = vmatpush.msrb.mxu2 %v240_v1  ;;  %286 = vmatpush.msrb.mxu0 %v279_v21  ;;  %v376_v1 = vld [vmem:[%s1038_s9 + $0x10] sm:$0xff] }
  0x36   :  { %330 = vmatpush.msrb.mxu1 %v308_v43  ;;  %364 = vmatpush.msrb.mxu3 %v342_v54  ;;  %v472_v43 = vld [vmem:[%s1037_s8 + $0x30] sm:$0xff] }
  0x37   :  { %252 = vmatpush.msrb.mxu2 %v239_v2  ;;  %287 = vmatpush.msrb.mxu0 %v278_v22 }
  0x38   :  { %331 = vmatpush.msrb.mxu1 %v307_v44  ;;  %365 = vmatpush.msrb.mxu3 %v341_v58  ;;  %v471_v44 = vld [vmem:[%s1037_s8 + $0x28] sm:$0xff] }
  0x39   :  { %253 = vmatpush.msrb.mxu2 %v238_v3  ;;  %288 = vmatpush.msrb.mxu0 %v277_v23 }
  0x3a   :  { %332 = vmatpush.msrb.mxu1 %v306_v50  ;;  %344 = vrot.lane.b32.xlu0 %v79_v49, %s712_s16 }
  0x3b   :  { %254 = vmatpush.msrb.mxu2 %v237_v4  ;;  %289 = vmatpush.msrb.mxu0 %v276_v24  ;;  %v81_v24 = vld [vmem:[%s1039_s10 + $0x5] sm:$0x1] }
  0x3c   :  { %333 = vmatpush.msrb.mxu1 %v305_v51  ;;  %366 = vmatpush.msrb.mxu3 %v340_v59 }
  0x3d   :  { %255 = vmatpush.msrb.mxu2 %v236_v5  ;;  %290 = vmatpush.msrb.mxu0 %v275_v25 }
  0x3e   :  { %334 = vmatpush.msrb.mxu1 %v304_v52 }
  0x3f   :  { %256 = vmatpush.msrb.mxu2 %v235_v6  ;;  %291 = vmatpush.msrb.mxu0 %v274_v26  ;;  %v372_v6 = vld [vmem:[%s1030_s1] sm:$0x1] }
  0x40   :  { %420 = vmatpush.msra.mxu1 %v377_v62 }
  0x41   :  { %257 = vmatpush.msrb.mxu2 %v234_v7  ;;  %292 = vmatpush.msrb.mxu0 %v273_v27  ;;  %v375_v7 = vld [vmem:[%s1038_s9 + $0x8] sm:$0xff] }
  0x42   :  { %421 = vmatpush.msra.mxu1 %v376_v1 }
  0x43   :  { %258 = vmatpush.msrb.mxu2 %v233_v14  ;;  %293 = vmatpush.msrb.mxu0 %v272_v28  ;;  %v80_v14 = vld [vmem:[%s1039_s10 + $0x4] sm:$0x1] }
  0x44   :  { %422 = vmatpush.msra.mxu1 %v375_v7 }
  0x45   :  { %259 = vmatpush.msrb.mxu2 %v232_v15  ;;  %294 = vmatpush.msrb.mxu0 %v271_v29 }
  0x47   :  { %260 = vmatpush.msrb.mxu2 %v231_v16  ;;  %295 = vmatpush.msrb.mxu0 %v270_v30 }
  0x49   :  { %261 = vmatpush.msrb.mxu2 %v230_v17  ;;  %296 = vmatpush.msrb.mxu0 %v269_v37 }
  0x4b   :  { %297 = vmatpush.msrb.mxu0 %v268_v38  ;;  %491 = vmatpush.msra.mxu2 %v473_v42 }
  0x4d   :  { %298 = vmatpush.msrb.mxu0 %v267_v39  ;;  %492 = vmatpush.msra.mxu2 %v472_v43 }
  0x4f   :  { %493 = vmatpush.msra.mxu2 %v471_v44 }
  0xa4   :  { %v314_v2 = vpop.permute.xlu0 %313 }
  0xaa   :  { %v136_v9 = vpop.f32.mrf.mxu0  ;;  %v205_v31 = vpop.f32.mrf.mxu2 }
  0xab   :  { %v156_v10 = vpop.f32.mrf.mxu1  ;;  %v137_v11 = vadd.f32 %v136_v9, %v76_v8  ;;  %v374_v8 = vld [vmem:[%s1038_s9] sm:$0xff] }
  0xac   :  { %423 = vmatpush.msra.mxu1 %v374_v8  ;;  %v345_v9 = vpop.permute.xlu0 %344 }
  0xad   :  { %v157_v12 = vadd.f32 %v156_v10, %v137_v11 }
  0xaf   :  { %v159_v13 = vmax.f32 %v157_v12, 0.0 }
  0xb1   :  { %224 = vmatmul.f32.vlgmr.msra.gmra.mxu3 %v159_v13 }
  0xb2   :  { %397 = vmatpush.msra.mxu3 %v381_v60 }
  0xb4   :  { %398 = vmatpush.msra.mxu3 %v380_v61 }
  0xb6   :  { %399 = vmatpush.msra.mxu3 %v379_v63 }
  0xb8   :  { %400 = vmatpush.msra.mxu3 %v378_v0 }
 0x134   :  { %v225_v33 = vpop.f32.mrf.mxu3 }
 0x135   :  { %v226_v34 = vadd.f32 %v225_v33, %v205_v31 }
 0x137   :  { %v228_v35 = vadd.f32 %v226_v34, %v77_v32 }
 0x139   :  { %v229_v36 = vmax.f32 %v228_v35, 0.0 }
 0x13b   :  { %262 = vmatmul.f32.vlgmr.msrb.gmra.mxu2 %v229_v36 }
 0x1be   :  { %v263_v46 = vpop.f32.mrf.mxu2 }
 0x1bf   :  { %v264_v47 = vadd.f32 %v263_v46, %v78_v45  ;;  %v470_v45 = vld [vmem:[%s1037_s8 + $0x20] sm:$0xff]  ;;  %s714_s8 = smov [#allocation8]  }
 0x1c0   :  { %494 = vmatpush.msra.mxu2 %v470_v45 }
 0x1c1   :  { %v266_v48 = vmax.f32 %v264_v47, 0.0 }
 0x1c3   :  { %299 = vmatmul.f32.vlgmr.msrb.gmra.mxu0 %v266_v48 }
 0x240   :  { %v300_v55 = vpop.f32.mrf.mxu0 }
 0x241   :  { %v301_v56 = vadd.f32 %v300_v55, %v79_v49 }
 0x243   :  { %v303_v57 = vmax.f32 %v301_v56, 0.0 }
 0x245   :  { %577 = vmatmul.msk.f32.vlgmr.msrb.gmra.mxu1 %vm184_vm0, %v303_v57 }
 0x2c2   :  { %v336_v3 = vpop.f32.mrf.mxu1 }
 0x2c3   :  { %v337_v4 = vadd.f32 %v336_v3, %v314_v2 }
 0x2c5   :  { %v339_v5 = vmax.f32 %v337_v4, 0.0 }
 0x2c7   :  { %578 = vmatmul.msk.f32.vlgmr.msrb.gmra.mxu3 %vm347_vm1, %v339_v5 }
 0x2cf   :  { %579 = vmatmul.msk.f32.vlgmr.msra.gmra.mxu3 %vm347_vm1, %v372_v6 }
 0x34a   :  { %v368_v10 = vpop.f32.mrf.mxu3 }
 0x34b   :  { %v369_v11 = vadd.f32 %v368_v10, %v345_v9 }
 0x34d   :  { %v371_v12 = vmax.f32 %v369_v11, 0.0 }
 0x34f   :  { %580 = vmatmul.msk.f32.vlgmr.msra.gmra.mxu1 %vm347_vm1, %v371_v12 }
 0x352   :  { %v402_v13 = vpop.f32.mrf.mxu3 }
 0x3cc   :  { %v425_v15 = vpop.f32.mrf.mxu1 }
 0x3cd   :  { %v426_v16 = vadd.f32 %v425_v15, %v402_v13 }
 0x3cf   :  { %v428_v17 = vadd.f32 %v426_v16, %v80_v14 }
 0x3d1   :  { %591 = vtanh.f32 %v428_v17  ;;  %v429_v20 = vsub.f32 0.0, %v428_v17 }
 0x3d3   :  { %v430_v21 = vmul.f32 1.442695, %v429_v20 }
 0x3d5   :  { %593 = vpow2.f32 %v430_v21 }
 0x3d7   :  { %v592_v18 = vpop.eup %591 }
 0x3d8   :  { %455 = vrot.lane.b32.xlu1 %v592_v18, %s711_s25 }
 0x3db   :  { %v594_v22 = vpop.eup %593 }
 0x3dc   :  { %v432_v23 = vadd.f32 1.0, %v594_v22 }
 0x3de   :  { %595 = vrcp.f32 %v432_v23  ;;  %v444_v30 = vand.u32 2147483648, %v432_v23  ;;  %vm438_vm3 = vweird.f32 %v432_v23  ;;  %v442_v31 = vand.u32 2147483647, %v432_v23 }
 0x3e0   :  { %450 = vrot.lane.b32.xlu1 %v373_v19, %s712_s16  ;;  %v445_v33 = vor.u32 1.1754944e-38, %v444_v30  ;;  %vm443_vm5 = vcmp.eq.f32.partialorder %v442_v31, 8.507059e+37 }
 0x3e4   :  { %v596_v25 = vpop.eup %595 }
 0x3e5   :  { %v434_v26 = vmul.f32 %v596_v25, %v432_v23  ;;  %vm439_vm2 = vweird.f32 %v596_v25 }
 0x3e6   :  { %vm440_vm4 = vmor %vm438_vm3, %vm439_vm2 }
 0x3e7   :  { %v435_v27 = vsub.f32 1.0, %v434_v26 }
 0x3e8   :  { %501 = vrot.lane.b32.xlu1 %v81_v24, %s713_s20 }
 0x3e9   :  { %v436_v28 = vmul.f32 %v596_v25, %v435_v27 }
 0x3eb   :  { %v437_v29 = vadd.f32 %v596_v25, %v436_v28 }
 0x3ed   :  { %v441_v32 = vsel %vm440_vm4, %v596_v25, %v437_v29 }
 0x3ee   :  { %v446_v35 = vsel %vm443_vm5, %v445_v33, %v441_v32 }
 0x44a   :  { %v456_v34 = vpop.permute.xlu1 %455 }
 0x44b   :  { %v458_v36 = vmul.f32 %v456_v34, %v446_v35 }
 0x44d   :  { %460 = vrot.lane.b32.xlu2 %v458_v36, %s712_s16 }
 0x452   :  { %v451_v37 = vpop.permute.xlu1 %450 }
 0x453   :  { %v453_v38 = vmul.f32 %v451_v37, %v446_v35 }
 0x45a   :  { %v502_v48 = vpop.permute.xlu1 %501 }
 0x4a7   :  { %v461_v39 = vpop.permute.xlu2 %460 }
 0x4a8   :  { %v463_v40 = vadd.f32 %v461_v39, %v453_v38 }
 0x4aa   :  { %597 = vtanh.f32 %v463_v40  ;;  %538 = vrot.lane.b32.xlu1 %v463_v40, %s713_s20 }
 0x4b0   :  { %v598_v41 = vpop.eup %597 }
 0x4b1   :  { %466 = vrot.lane.b32.xlu2 %v598_v41, %s711_s25 }
 0x50b   :  { %v467_v46 = vpop.permute.xlu2 %466 }
 0x50c   :  { %v469_v47 = vmul.f32 %v467_v46, %v446_v35 }
 0x50e   :  { %475 = vrot.lane.b32.xlu0 %v469_v47, %s712_s16  ;;  %s558_s16 = sshll.u32 %s714_s8, 4  ;;  %s559_s16 = int_to_ptr.vmem [resolvable:$true] %s558_s16 }
 0x51c   :  { %v539_v49 = vpop.permute.xlu1 %538 }
 0x51d   :  { %541 = vst.msk [vmem:[#allocation8 + $0x1] sm:$0x1] %vm505_vm6, %v539_v49 }
 0x580   :  { %v476_v50 = vpop.permute.xlu0 %475 }
 0x581   :  { %536 = vst.msk [vmem:[#allocation8] sm:$0x1] %vm505_vm6, %v476_v50  ;;  %581 = vmatmul.msk.f32.vlgmr.msra.gmra.mxu2 %vm347_vm1, %v476_v50 }
 0x582   :  { %563 = dma.vmem_to_hbm [thread:$0]  %s559_s16, 32, %s561_s26, [#allocation9]  }
 0x604   :  { %v496_v51 = vpop.f32.mrf.mxu2 }
 0x605   :  { %v497_v52 = vadd.f32 %v496_v51, %v81_v24 }
 0x607   :  { %v499_v53 = vmax.f32 %v497_v52, 0.0 }
 0x609   :  { %v504_v54 = vmul.f32 %v502_v48, %v499_v53 }
 0x60b   :  { %v506_v55 = vsel %vm505_vm6, %v504_v54, 0.0 }
 0x60c   :  { %507 = vadd.xlane.f32.xlu2 %v506_v55 }
 0x67f   :  { %v508_v56 = vpop.xlane.xlu2 %507 }
 0x680   :  { %v509_v57 = vadd.f32 %v508_v56, %v81_v24 }
 0x682   :  { %v510_v58 = vsub.f32 0.0, %v509_v57 }
 0x684   :  { %v511_v59 = vmul.f32 1.442695, %v510_v58 }
 0x686   :  { %599 = vpow2.f32 %v511_v59 }
 0x68c   :  { %v600_v60 = vpop.eup %599 }
 0x68d   :  { %v513_v61 = vadd.f32 1.0, %v600_v60 }
 0x68f   :  { %601 = vrcp.f32 %v513_v61  ;;  %v525_v1 = vand.u32 2147483648, %v513_v61  ;;  %v523_v3 = vand.u32 2147483647, %v513_v61  ;;  %vm519_vm8 = vweird.f32 %v513_v61 }
 0x691   :  { %v526_v5 = vor.u32 1.1754944e-38, %v525_v1  ;;  %vm524_vm10 = vcmp.eq.f32.partialorder %v523_v3, 8.507059e+37 }
 0x695   :  { %v602_v62 = vpop.eup %601 }
 0x696   :  { %v515_v63 = vmul.f32 %v602_v62, %v513_v61  ;;  %vm520_vm7 = vweird.f32 %v602_v62 }
 0x697   :  { %vm521_vm9 = vmor %vm519_vm8, %vm520_vm7 }
 0x698   :  { %v516_v0 = vsub.f32 1.0, %v515_v63 }
 0x69a   :  { %v517_v2 = vmul.f32 %v602_v62, %v516_v0 }
 0x69c   :  { %v518_v4 = vadd.f32 %v602_v62, %v517_v2 }
 0x69e   :  { %v522_v6 = vsel %vm521_vm9, %v602_v62, %v518_v4 }
 0x69f   :  { %v527_v7 = vsel %vm524_vm10, %v526_v5, %v522_v6 }
 0x6a0   :  { %530 = vrot.lane.b32.xlu0 %v527_v7, %s711_s25 }
 0x712   :  { %v531_v8 = vpop.permute.xlu0 %530 }
 0x713   :  { %534 = vst.msk [vmem:[#allocation7] sm:$0x1] %vm533_vm11, %v531_v8 }
 0x714   :  { %552 = dma.vmem_to_hbm [thread:$0]  %s548_s27, 16, %s550_s30, [#allocation4]  }
 0x715   :  { %703 = dma.done.wait [#allocation4], 16  }
 0x716   :  { %704 = vsyncadd [#allocation4], 4294967280 }
 0x717   :  { %705 = dma.done.wait [#allocation9], 32  }
 0x718   :  { %706 = vsyncadd [#allocation9], 4294967264 }
 0x719   :  { %572 = vsyncpa [#allocation3], 1 }
 0x71a   :  { %573 = vsyncpa [#allocation6], 1 }
 0x71b   :  { %574 = vsyncpa [#allocation4], 1 }
 0x71c   :  { %575 = vsyncpa [#allocation9], 1 }

</bundles_post_ra>
